<compile_context>
chip_gen: v7x
topology: tpu7x:2x2x1
jax: 0.10.0
libtpu: 0.0.40
codegen_flags: <defaults>
</compile_context>

<pallas_src>
import functools

import jax
import jax.numpy as jnp
from jax.experimental import pallas as pl
from jax.experimental.pallas import tpu as pltpu


def _round_up(n, m):
    return (n + m - 1) // m * m


def _box_head_kernel(num_layers, x_ref, *refs):
    """refs = (w0, b0, ..., w_{L-1}, b_{L-1}, out_ref).

    x_ref   : (block_b, in_features) f32 tile of the flattened input.
    w_i     : (d_in, d_out) bf16, resident in VMEM across grid steps.
    b_i     : (1, d_out)    f32.
    out_ref : (block_b, 4)  f32 xyxy tile.
    """
    out_ref = refs[-1]
    wb = refs[:-1]

    # Cast to bf16 in-kernel (VPU) so the MXU runs single-pass bf16 matmuls;
    # this replaces the wrapper-side full-array cast (one fewer HBM pass).
    h_lo = x_ref[...].astype(jnp.bfloat16)

    # Hidden layers: bf16 MXU matmul, f32 accumulate, f32 bias + ReLU on VPU.
    for i in range(num_layers - 1):
        w = wb[2 * i][...]                                    # bf16 (d_in, d_out)
        b = wb[2 * i + 1][...]                                # f32  (1, d_out)
        h32 = jnp.dot(h_lo, w, preferred_element_type=jnp.float32) + b
        h_lo = jnp.maximum(h32, 0.0).astype(jnp.bfloat16)     # ReLU, back to bf16

    # Final layer -> 4 logits, sigmoid (EUP), xywh -> xyxy epilogue (tiny
    # width-4 slice + concat; rows are independent so ragged tail rows are
    # harmless garbage that never reaches the (B, 4) output).
    w_last = wb[2 * (num_layers - 1)][...]
    b_last = wb[2 * (num_layers - 1) + 1][...]
    logits = jnp.dot(h_lo, w_last, preferred_element_type=jnp.float32) + b_last

    s = jax.nn.sigmoid(logits)                                # (block_b, 4) xywh
    x1y1 = s[:, 0:2]
    wh = s[:, 2:4]
    out_ref[...] = jnp.concatenate([x1y1, x1y1 + wh], axis=1)  # xyxy


def _choose_block_b(batch, *, max_block_b=512):
    """Batch tile: whole array for tiny B; otherwise a multiple of 8 aiming for
    >= 2 grid steps (pipeline overlap), capped at 512 rows for VMEM safety."""
    if batch <= 8:
        return batch                       # single whole-array block
    half = _round_up(pl.cdiv(batch, 2), 8)
    return max(8, min(max_block_b, half))


def _dimension_semantics(num_blocks):
    """CORE_PARALLEL only on v7x (2 TCs) and only when there is >1 batch tile;
    plain 'parallel' elsewhere (v5e / v6e have a single TensorCore)."""
    try:
        kind = jax.devices()[0].device_kind.lower()
    except Exception:
        kind = ""
    if num_blocks >= 2 and "v7" in kind:
        return (pltpu.CORE_PARALLEL,)
    return ("parallel",)


def box_regression_head(x, params, *, max_block_b=512):
    """x: (B, 2, 256) float; params: list of (W (d_in, d_out), b (d_out,)).

    Returns (B, 4) float32 xyxy boxes, matching the PyTorch forward.
    """
    batch = x.shape[0]
    in_features = 1
    for d in x.shape[1:]:
        in_features *= d
    num_layers = len(params)

    # torch.flatten(1): row-major reshape. No pad, no cast (both were extra
    # HBM passes over the dominant x stream).
    x_flat = x.reshape(batch, in_features)

    block_b = _choose_block_b(batch, max_block_b=max_block_b)
    num_blocks = pl.cdiv(batch, block_b)

    flat_args = [x_flat]
    in_specs = [pl.BlockSpec((block_b, in_features), lambda i: (i, 0))]
    weight_bytes = 0
    for w, b in params:
        w_lo = jnp.asarray(w, jnp.float32).astype(jnp.bfloat16)   # MXU operand
        b32 = jnp.asarray(b, jnp.float32).reshape(1, -1)          # f32 bias add
        flat_args += [w_lo, b32]
        # Full-array blocks + constant index_map: DMA'd once, resident in VMEM.
        in_specs += [pl.BlockSpec(w_lo.shape, lambda i: (0, 0)),
                     pl.BlockSpec(b32.shape, lambda i: (0, 0))]
        weight_bytes += w_lo.size * 2 + b32.size * 4

    kernel = functools.partial(_box_head_kernel, num_layers)

    cost = pl.CostEstimate(
        flops=2 * batch * sum(int(w.shape[0]) * int(w.shape[1]) for w, _ in params),
        transcendentals=4 * batch,                                # sigmoid epilogue
        bytes_accessed=(batch * in_features * x_flat.dtype.itemsize
                        + batch * 4 * 4 + weight_bytes),
    )

    out = pl.pallas_call(
        kernel,
        out_shape=jax.ShapeDtypeStruct((batch, 4), jnp.float32),
        grid=(num_blocks,),
        in_specs=in_specs,
        out_specs=pl.BlockSpec((block_b, 4), lambda i: (i, 0)),
        compiler_params=pltpu.CompilerParams(
            dimension_semantics=_dimension_semantics(num_blocks),
        ),
        cost_estimate=cost,
    )(*flat_args)

    # TODO(synk): at tiny B (e.g. B=2) this standalone call is pure launch/DMA
    # latency; fuse the head into the producer of x or batch many prompts.
    return out


def init_params(key, in_features, hidden_dim, num_layers):
    """Deterministic init mirroring nn.Linear's uniform(-1/sqrt(fan_in), ...)."""
    dims = [in_features] + [hidden_dim] * (num_layers - 1) + [4]
    params = []
    for i in range(num_layers):
        key, kw, kb = jax.random.split(key, 3)
        bound = 1.0 / float(dims[i]) ** 0.5
        w = jax.random.uniform(kw, (dims[i], dims[i + 1]), jnp.float32, -bound, bound)
        b = jax.random.uniform(kb, (dims[i + 1],), jnp.float32, -bound, bound)
        params.append((w, b))
    return params


def _reference(x, params):
    """Pure-JAX mirror of the PyTorch forward. Matmuls in bf16 with f32
    accumulation to match the kernel's precision contract (~1e-3 rel. vs fp32)."""
    h = x.reshape(x.shape[0], -1)
    n = len(params)
    logits = None
    for i, (w, b) in enumerate(params):
        logits = jnp.dot(h.astype(jnp.bfloat16), w.astype(jnp.bfloat16),
                         preferred_element_type=jnp.float32) + b
        if i < n - 1:
            h = jnp.maximum(logits, 0.0)
    xywh = jax.nn.sigmoid(logits)
    x1y1 = xywh[:, :2]
    wh = xywh[:, 2:]
    return jnp.concatenate([x1y1, x1y1 + wh], axis=1)


if __name__ == "__main__":
    in_features = 2 * 256   # x.flatten(1) on (B, 2, 256)
    hidden_dim = 64
    num_layers = 3

    key = jax.random.PRNGKey(0)
    key_x, key_p, key_x2 = jax.random.split(key, 3)
    params = init_params(key_p, in_features, hidden_dim, num_layers)

    # Primary small-shape check (B=2: single whole-array block, grid=1).
    B = 2
    x = jax.random.normal(key_x, (B, 2, 256), dtype=jnp.float32)
    out = jax.block_until_ready(box_regression_head(x, params))
    ref = _reference(x, params)
    assert out.shape == (B, 4), out.shape
    assert bool(jnp.all(jnp.isfinite(out)))
    assert jnp.allclose(out, ref, atol=2e-3, rtol=1e-3), (out, ref)

    # Secondary check exercising the multi-step pipeline + ragged tail block.
    B2 = 20
    x2 = jax.random.normal(key_x2, (B2, 2, 256), dtype=jnp.float32)
    out2 = jax.block_until_ready(box_regression_head(x2, params))
    ref2 = _reference(x2, params)
    assert out2.shape == (B2, 4), out2.shape
    assert bool(jnp.all(jnp.isfinite(out2)))
    assert jnp.allclose(out2, ref2, atol=2e-3, rtol=1e-3), (out2, ref2)

    print("KERNEL_OK")
</pallas_src>

<mosaic_0001>
module attributes {stable_mosaic.version = 11 : i64} {
  func.func @_box_head_kernel(%arg0: i32, %arg1: memref<2x512xf32, #tpu.memory_space<vmem>>, %arg2: memref<512x64xbf16, #tpu.memory_space<vmem>>, %arg3: memref<1x64xf32, #tpu.memory_space<vmem>>, %arg4: memref<64x64xbf16, #tpu.memory_space<vmem>>, %arg5: memref<1x64xf32, #tpu.memory_space<vmem>>, %arg6: memref<64x4xbf16, #tpu.memory_space<vmem>>, %arg7: memref<1x4xf32, #tpu.memory_space<vmem>>, %arg8: memref<2x4xf32, #tpu.memory_space<vmem>>) attributes {dimension_semantics = [#tpu.dimension_semantics<parallel>], iteration_bounds = array<i64: 1>, scalar_prefetch = 0 : i64, scratch_operands = 0 : i64, tpu.core_type = #tpu.core_type<tc>, window_params = [{transform_indices = @transform_0, window_bounds = array<i64: 2, 512>}, {pipeline_mode = #tpu.pipeline_mode<synchronous>, transform_indices = @transform_1, window_bounds = array<i64: 512, 64>}, {pipeline_mode = #tpu.pipeline_mode<synchronous>, transform_indices = @transform_2, window_bounds = array<i64: 1, 64>}, {pipeline_mode = #tpu.pipeline_mode<synchronous>, transform_indices = @transform_3, window_bounds = array<i64: 64, 64>}, {pipeline_mode = #tpu.pipeline_mode<synchronous>, transform_indices = @transform_4, window_bounds = array<i64: 1, 64>}, {pipeline_mode = #tpu.pipeline_mode<synchronous>, transform_indices = @transform_5, window_bounds = array<i64: 64, 4>}, {pipeline_mode = #tpu.pipeline_mode<synchronous>, transform_indices = @transform_6, window_bounds = array<i64: 1, 4>}, {transform_indices = @transform_7, window_bounds = array<i64: 2, 4>}]} {
    %c0 = arith.constant 0 : index
    %c0_0 = arith.constant 0 : index
    %0 = vector.load %arg1[%c0, %c0_0] : memref<2x512xf32, #tpu.memory_space<vmem>>, vector<2x512xf32>
    %1 = arith.truncf %0 : vector<2x512xf32> to vector<2x512xbf16>
    %c0_1 = arith.constant 0 : index
    %c0_2 = arith.constant 0 : index
    %2 = vector.load %arg2[%c0_1, %c0_2] : memref<512x64xbf16, #tpu.memory_space<vmem>>, vector<512x64xbf16>
    %c0_3 = arith.constant 0 : index
    %c0_4 = arith.constant 0 : index
    %3 = vector.load %arg3[%c0_3, %c0_4] : memref<1x64xf32, #tpu.memory_space<vmem>>, vector<1x64xf32>
    %cst = arith.constant dense<0.000000e+00> : vector<2x64xf32>
    %4 = tpu.matmul %1, %2, %cst {dimension_numbers = #tpu.dot_dimension_numbers<[1], [0], [0], [1], [0, 0, 1, 1], [], []>} : vector<2x512xbf16>, vector<512x64xbf16>, vector<2x64xf32> -> vector<2x64xf32>
    %5 = vector.broadcast %3 : vector<1x64xf32> to vector<2x64xf32>
    %6 = arith.addf %4, %5 : vector<2x64xf32>
    %cst_5 = arith.constant 0.000000e+00 : f32
    %7 = vector.broadcast %cst_5 : f32 to vector<2x64xf32>
    %8 = arith.maximumf %6, %7 : vector<2x64xf32>
    %9 = arith.truncf %8 : vector<2x64xf32> to vector<2x64xbf16>
    %c0_6 = arith.constant 0 : index
    %c0_7 = arith.constant 0 : index
    %10 = vector.load %arg4[%c0_6, %c0_7] : memref<64x64xbf16, #tpu.memory_space<vmem>>, vector<64x64xbf16>
    %c0_8 = arith.constant 0 : index
    %c0_9 = arith.constant 0 : index
    %11 = vector.load %arg5[%c0_8, %c0_9] : memref<1x64xf32, #tpu.memory_space<vmem>>, vector<1x64xf32>
    %cst_10 = arith.constant dense<0.000000e+00> : vector<2x64xf32>
    %12 = tpu.matmul %9, %10, %cst_10 {dimension_numbers = #tpu.dot_dimension_numbers<[1], [0], [0], [1], [0, 0, 1, 1], [], []>} : vector<2x64xbf16>, vector<64x64xbf16>, vector<2x64xf32> -> vector<2x64xf32>
    %13 = vector.broadcast %11 : vector<1x64xf32> to vector<2x64xf32>
    %14 = arith.addf %12, %13 : vector<2x64xf32>
    %cst_11 = arith.constant 0.000000e+00 : f32
    %15 = vector.broadcast %cst_11 : f32 to vector<2x64xf32>
    %16 = arith.maximumf %14, %15 : vector<2x64xf32>
    %17 = arith.truncf %16 : vector<2x64xf32> to vector<2x64xbf16>
    %c0_12 = arith.constant 0 : index
    %c0_13 = arith.constant 0 : index
    %18 = vector.load %arg6[%c0_12, %c0_13] : memref<64x4xbf16, #tpu.memory_space<vmem>>, vector<64x4xbf16>
    %c0_14 = arith.constant 0 : index
    %c0_15 = arith.constant 0 : index
    %19 = vector.load %arg7[%c0_14, %c0_15] : memref<1x4xf32, #tpu.memory_space<vmem>>, vector<1x4xf32>
    %cst_16 = arith.constant dense<0.000000e+00> : vector<2x4xf32>
    %20 = tpu.matmul %17, %18, %cst_16 {dimension_numbers = #tpu.dot_dimension_numbers<[1], [0], [0], [1], [0, 0, 1, 1], [], []>} : vector<2x64xbf16>, vector<64x4xbf16>, vector<2x4xf32> -> vector<2x4xf32>
    %21 = vector.broadcast %19 : vector<1x4xf32> to vector<2x4xf32>
    %22 = arith.addf %20, %21 : vector<2x4xf32>
    %23 = arith.negf %22 : vector<2x4xf32>
    %24 = math.exp %23 : vector<2x4xf32>
    %cst_17 = arith.constant 1.000000e+00 : f32
    %25 = vector.broadcast %cst_17 : f32 to vector<2x4xf32>
    %26 = arith.addf %25, %24 : vector<2x4xf32>
    %27 = arith.divf %25, %26 : vector<2x4xf32>
    %28 = vector.extract_strided_slice %27 {offsets = [0, 0], sizes = [2, 2], strides = [1, 1]} : vector<2x4xf32> to vector<2x2xf32>
    %29 = vector.extract_strided_slice %27 {offsets = [0, 2], sizes = [2, 2], strides = [1, 1]} : vector<2x4xf32> to vector<2x2xf32>
    %30 = arith.addf %28, %29 : vector<2x2xf32>
    %31 = tpu.concatenate %28, %30 in 1 : vector<2x2xf32>, vector<2x2xf32> -> vector<2x4xf32>
    %c0_18 = arith.constant 0 : index
    %c0_19 = arith.constant 0 : index
    %32 = vector.load %arg8[%c0_18, %c0_19] : memref<2x4xf32, #tpu.memory_space<vmem>>, vector<2x4xf32>
    tpu.vector_store %arg8[%c0_18, %c0_19], %31 {strides = array<i32>} : memref<2x4xf32, #tpu.memory_space<vmem>>, vector<2x4xf32>,
    return
  }
  func.func @transform_0(%arg0: i32) -> (i32, i32) {
    %c0_i32 = arith.constant 0 : i32
    %c0_i32_0 = arith.constant 0 : i32
    return %arg0, %c0_i32 : i32, i32
  }
  func.func @transform_1(%arg0: i32) -> (i32, i32) {
    %c0_i32 = arith.constant 0 : i32
    %c0_i32_0 = arith.constant 0 : i32
    %c0_i32_1 = arith.constant 0 : i32
    return %c0_i32, %c0_i32_0 : i32, i32
  }
  func.func @transform_2(%arg0: i32) -> (i32, i32) {
    %c0_i32 = arith.constant 0 : i32
    %c0_i32_0 = arith.constant 0 : i32
    %c0_i32_1 = arith.constant 0 : i32
    return %c0_i32, %c0_i32_0 : i32, i32
  }
  func.func @transform_3(%arg0: i32) -> (i32, i32) {
    %c0_i32 = arith.constant 0 : i32
    %c0_i32_0 = arith.constant 0 : i32
    %c0_i32_1 = arith.constant 0 : i32
    return %c0_i32, %c0_i32_0 : i32, i32
  }
  func.func @transform_4(%arg0: i32) -> (i32, i32) {
    %c0_i32 = arith.constant 0 : i32
    %c0_i32_0 = arith.constant 0 : i32
    %c0_i32_1 = arith.constant 0 : i32
    return %c0_i32, %c0_i32_0 : i32, i32
  }
  func.func @transform_5(%arg0: i32) -> (i32, i32) {
    %c0_i32 = arith.constant 0 : i32
    %c0_i32_0 = arith.constant 0 : i32
    %c0_i32_1 = arith.constant 0 : i32
    return %c0_i32, %c0_i32_0 : i32, i32
  }
  func.func @transform_6(%arg0: i32) -> (i32, i32) {
    %c0_i32 = arith.constant 0 : i32
    %c0_i32_0 = arith.constant 0 : i32
    %c0_i32_1 = arith.constant 0 : i32
    return %c0_i32, %c0_i32_0 : i32, i32
  }
  func.func @transform_7(%arg0: i32) -> (i32, i32) {
    %c0_i32 = arith.constant 0 : i32
    %c0_i32_0 = arith.constant 0 : i32
    return %arg0, %c0_i32 : i32, i32
  }
}

</mosaic_0001>

<bundles_post_ra>
// kernel: tpu_custom_call.1
= control target key start
LH: loop header
LB: loop body
LE: loop exit
PB: predicated region body
PF: predicated region fallthrough
CT: control target
= control target key end

     0   :  { %v34_v29 = vlaneseq  ;;  %v799_v35 = vmov 1983009808   ;;  %v800_v37 = vmov 0.0   ;;  %s991_s0 = inlined_call_operand.vmem [shape: f32[2,512], index: 0, kind: input, shape index: {}]   ;;  %s992_s1 = inlined_call_operand.vmem [shape: bf16[512,64], index: 1, kind: input, shape index: {}]   ;;  %s993_s2 = inlined_call_operand.vmem [shape: f32[1,64], index: 2, kind: input, shape index: {}]   ;;  %s994_s3 = inlined_call_operand.vmem [shape: bf16[64,64], index: 3, kind: input, shape index: {}]   ;;  %s995_s4 = inlined_call_operand.vmem [shape: f32[1,64], index: 4, kind: input, shape index: {}]   ;;  %s996_s5 = inlined_call_operand.vmem [shape: bf16[64,4], index: 5, kind: input, shape index: {}]   ;;  %s997_s6 = inlined_call_operand.vmem [shape: f32[1,4], index: 6, kind: input, shape index: {}]   ;;  %s998_s7 = inlined_call_operand.hbm [shape: f32[2,4], index: 7, kind: output, shape index: {}]  }
   0x1   :  { %v730_v0 = vld [vmem:[%s992_s1 + $0x40] sm:$0xff]   ;;  %v734_v4 = vld [vmem:[%s992_s1 + $0x48] sm:$0xff]   ;;  %v738_v8 = vld [vmem:[%s992_s1 + $0x50] sm:$0xff]   ;;  %v32_v36 = vunpack.c.l.s4 %v799_v35 }
   0x2   :  { %v731_v1 = vld [vmem:[%s992_s1 + $0xc0] sm:$0xff]   ;;  %646 = vmatprep.subr.bf16.mxu0 %v730_v0  ;;  %v735_v5 = vld [vmem:[%s992_s1 + $0xc8] sm:$0xff]   ;;  %v739_v9 = vld [vmem:[%s992_s1 + $0xd0] sm:$0xff]   ;;  %v35_v34 = vshrl.u32 %v34_v29, 7 }
   0x3   :  { %v732_v2 = vld [vmem:[%s992_s1] sm:$0xff]   ;;  %668 = vmatprep.subr.bf16.mxu1 %v731_v1  ;;  %v736_v6 = vld [vmem:[%s992_s1 + $0x8] sm:$0xff]   ;;  %v740_v10 = vld [vmem:[%s992_s1 + $0x10] sm:$0xff]   ;;  %v33_v38 = vunpack.c.0.s8 %v32_v36 }
   0x4   :  { %v733_v3 = vld [vmem:[%s992_s1 + $0x80] sm:$0xff]   ;;  %647 = vmatpush3.bf16.msra.mxu0 %v732_v2  ;;  %v737_v7 = vld [vmem:[%s992_s1 + $0x88] sm:$0xff]   ;;  %v741_v11 = vld [vmem:[%s992_s1 + $0x90] sm:$0xff]  }
   0x5   :  { %669 = vmatpush3.bf16.msra.mxu1 %v733_v3  ;;  %648 = vmatprep.subr.bf16.mxu0 %v734_v4  ;;  %v742_v12 = vld [vmem:[%s992_s1 + $0x58] sm:$0xff]   ;;  %v746_v16 = vld [vmem:[%s992_s1 + $0x60] sm:$0xff]   ;;  %v750_v20 = vld [vmem:[%s992_s1 + $0x68] sm:$0xff]   ;;  %v36_v40 = vsub.s32 %v33_v38, %v35_v34 }
   0x6   :  { %670 = vmatprep.subr.bf16.mxu1 %v735_v5  ;;  %v743_v13 = vld [vmem:[%s992_s1 + $0xd8] sm:$0xff]   ;;  %v747_v17 = vld [vmem:[%s992_s1 + $0xe0] sm:$0xff]   ;;  %v751_v21 = vld [vmem:[%s992_s1 + $0xe8] sm:$0xff]  }
   0x7   :  { %v744_v14 = vld [vmem:[%s992_s1 + $0x18] sm:$0xff]   ;;  %v748_v18 = vld [vmem:[%s992_s1 + $0x20] sm:$0xff]   ;;  %v752_v22 = vld [vmem:[%s992_s1 + $0x28] sm:$0xff]  }
   0x8   :  { %649 = vmatpush3.bf16.msra.mxu0 %v736_v6  ;;  %v745_v15 = vld [vmem:[%s992_s1 + $0x98] sm:$0xff]   ;;  %v749_v19 = vld [vmem:[%s992_s1 + $0xa0] sm:$0xff]   ;;  %v753_v23 = vld [vmem:[%s992_s1 + $0xa8] sm:$0xff]  }
   0x9   :  { %671 = vmatpush3.bf16.msra.mxu1 %v737_v7  ;;  %650 = vmatprep.subr.bf16.mxu0 %v738_v8  ;;  %v754_v24 = vld [vmem:[%s992_s1 + $0x70] sm:$0xff]   ;;  %v758_v28 = vld [vmem:[%s992_s1 + $0x78] sm:$0xff]   ;;  %v28_v33 = vld [vmem:[%s991_s0] sm:$0xff] }
   0xa   :  { %672 = vmatprep.subr.bf16.mxu1 %v739_v9  ;;  %v755_v25 = vld [vmem:[%s992_s1 + $0xf0] sm:$0xff]   ;;  %v759_v30 = vld [vmem:[%s992_s1 + $0xf8] sm:$0xff]   ;;  %v30_v39 = vcombine.high %v28_v33, %v28_v33 }
   0xb   :  { %v756_v26 = vld [vmem:[%s992_s1 + $0x30] sm:$0xff]   ;;  %v760_v31 = vld [vmem:[%s992_s1 + $0x38] sm:$0xff]  }
   0xc   :  { %651 = vmatpush3.bf16.msra.mxu0 %v740_v10  ;;  %v757_v27 = vld [vmem:[%s992_s1 + $0xb0] sm:$0xff]   ;;  %v761_v32 = vld [vmem:[%s992_s1 + $0xb8] sm:$0xff]  }
   0xd   :  { %673 = vmatpush3.bf16.msra.mxu1 %v741_v11  ;;  %652 = vmatprep.subr.bf16.mxu0 %v742_v12 }
   0xe   :  { %674 = vmatprep.subr.bf16.mxu1 %v743_v13 }
  0x10   :  { %653 = vmatpush3.bf16.msra.mxu0 %v744_v14 }
  0x11   :  { %675 = vmatpush3.bf16.msra.mxu1 %v745_v15  ;;  %654 = vmatprep.subr.bf16.mxu0 %v746_v16 }
  0x12   :  { %676 = vmatprep.subr.bf16.mxu1 %v747_v17 }
  0x14   :  { %655 = vmatpush3.bf16.msra.mxu0 %v748_v18 }
  0x15   :  { %677 = vmatpush3.bf16.msra.mxu1 %v749_v19  ;;  %656 = vmatprep.subr.bf16.mxu0 %v750_v20 }
  0x16   :  { %678 = vmatprep.subr.bf16.mxu1 %v751_v21 }
  0x18   :  { %657 = vmatpush3.bf16.msra.mxu0 %v752_v22 }
  0x19   :  { %679 = vmatpush3.bf16.msra.mxu1 %v753_v23  ;;  %658 = vmatprep.subr.bf16.mxu0 %v754_v24 }
  0x1a   :  { %680 = vmatprep.subr.bf16.mxu1 %v755_v25 }
  0x1c   :  { %659 = vmatpush3.bf16.msra.mxu0 %v756_v26 }
  0x1d   :  { %681 = vmatpush3.bf16.msra.mxu1 %v757_v27  ;;  %660 = vmatprep.subr.bf16.mxu0 %v758_v28 }
  0x1e   :  { %682 = vmatprep.subr.bf16.mxu1 %v759_v30 }
  0x20   :  { %661 = vmatpush3.bf16.msra.mxu0 %v760_v31 }
  0x21   :  { %683 = vmatpush3.bf16.msra.mxu1 %v761_v32  ;;  %700 = vmatprep.subr.bf16.mxu0 %v800_v37 }
  0x22   :  { %712 = vmatprep.subr.bf16.mxu1 %v800_v37 }
  0x23   :  { %12 = vsyncpa [#allocation3], 0  ;;  %v37_v41 = vrot.slane %v28_v33, %v36_v40  ;;  %v44_v42 = vrot.slane %v30_v39, %v36_v40  ;;  %v763_v49 = vld [vmem:[%s994_s3] sm:$0xff]   ;;  %v764_v50 = vld [vmem:[%s994_s3 + $0x8] sm:$0xff]   ;;  %vm801_vm0 = vmmov 0   ;;  %vm439_vm1 = vcmask 523264  }
  0x24   :  { %v765_v51 = vld [vmem:[%s994_s3 + $0x10] sm:$0xff]   ;;  %v766_v52 = vld [vmem:[%s994_s3 + $0x18] sm:$0xff]   ;;  %v767_v53 = vld [vmem:[%s996_s5] sm:$0xff]   ;;  %s804_s16 = smov [#allocation2]   ;;  %vm582_vm2 = vcmask 15360   ;;  %vm584_vm3 = vcmask 25600  }
  0x25   :  { %v45_v43 = vcombine.high %v37_v41, %v37_v41  ;;  %v46_v44 = vcombine.high %v44_v42, %v44_v42  ;;  %v51_v45 = vpack.c.bf16 %v37_v41, %v37_v41  ;;  %v53_v46 = vpack.c.bf16 %v44_v42, %v44_v42  ;;  %v768_v54 = vld [vmem:[%s996_s5 + $0x8] sm:$0xff]   ;;  %v600_v57 = vld [vmem:[%s993_s2] ss:$0 sm:$0xff]  ;;  %v769_v6 = vld [vmem:[%s996_s5 + $0x10] sm:$0xff]   ;;  %s592_s17 = sshll.u32 %s804_s16, 4  ;;  %s593_s17 = int_to_ptr.vmem [resolvable:$true] %s592_s17 }
  0x26   :  { %v770_v7 = vld [vmem:[%s996_s5 + $0x18] sm:$0xff]   ;;  %v633_v8 = vld [vmem:[%s995_s4] ss:$0 sm:$0xff]  ;;  %s802_s4 = smov 126   ;;  %s803_s5 = smov 2  }
  0x27   :  { %v52_v47 = vpack.c.bf16 %v45_v43, %v45_v43  ;;  %v54_v48 = vpack.c.bf16 %v46_v44, %v46_v44  ;;  %v639_v16 = vld [vmem:[%s997_s6] ss:$0 sm:$0xff]  ;;  %s775_s6 = scalar_lea.vmem %s593_s17, 32  ;;  %p780_p1 = scmp.lt.s32.totalorder %s593_s17, %s593_s17 }
  0x28   :  { %p776_p0 = scmp.ne.s32.totalorder %s593_s17, %s775_s6  ;;  %p781_p2 = scmp.lt.s32.totalorder %s775_s6, %s775_s6 }
  0x29   :  { %350 = vmatprep.mubr.bf16.mxu0 %v52_v47  ;;  %390 = vmatprep.mubr.bf16.mxu1 %v54_v48 }
  0x2a   :  { %351 = vmatmul.mubr.bf16.vlgmr.msra.gmra.mrb[0].mxu0 %v51_v45  ;;  %391 = vmatmul.mubr.bf16.vlgmr.msra.gmra.mrb[0].mxu1 %v53_v46  ;;  %p782_p3 = por %p781_p2, %p780_p1 }
  0x2b   :  { %701 = vmatpush3.bf16.msra.mxu0 %v763_v49  ;;  %708 = vmatprep.mubr.msk.bf16.mxu0 %vm801_vm0, %v800_v37 }
  0x2c   :  { %702 = vmatprep.subr.bf16.mxu0 %v800_v37  ;;  %720 = vmatprep.mubr.msk.bf16.mxu1 %vm801_vm0, %v800_v37  ;;  %p783_p4 = pnand %p782_p3, %p776_p0 }
  0x2d   :  { %713 = vmatpush3.bf16.msra.mxu1 %v767_v53 }
  0x2e   :  { %714 = vmatprep.subr.bf16.mxu1 %v800_v37 }
  0x2f   :  { %703 = vmatpush3.bf16.msra.mxu0 %v764_v50 }
  0x30   :  { %704 = vmatprep.subr.bf16.mxu0 %v800_v37 }
  0x31   :  { %715 = vmatpush3.bf16.msra.mxu1 %v768_v54 }
  0x32   :  { %716 = vmatprep.subr.bf16.mxu1 %v800_v37 }
  0x33   :  { %705 = vmatpush3.bf16.msra.mxu0 %v765_v51 }
  0x34   :  { %706 = vmatprep.subr.bf16.mxu0 %v800_v37 }
  0x35   :  { %717 = vmatpush3.bf16.msra.mxu1 %v769_v6 }
  0x36   :  { %718 = vmatprep.subr.bf16.mxu1 %v800_v37 }
  0x37   :  { %707 = vmatpush3.bf16.msra.mxu0 %v766_v52 }
  0x39   :  { %719 = vmatpush3.bf16.msra.mxu1 %v770_v7 }
  0xfd   :  { %v662_v55 = vpop.f32.mrb[0].mxu0  ;;  %v684_v56 = vpop.f32.mrb[0].mxu1 }
  0xfe   :  { %v663_v58 = vpop.f32.mrb[1].mxu0  ;;  %v685_v59 = vpop.f32.mrb[1].mxu1 }
  0xff   :  { %v664_v60 = vadd.f32 %v663_v58, %v662_v55  ;;  %v686_v61 = vadd.f32 %v685_v59, %v684_v56  ;;  %v665_v62 = vpop.f32.mrb[2].mxu0  ;;  %v687_v63 = vpop.f32.mrb[2].mxu1 }
 0x100   :  { %v666_v0 = vpop.f32.mrb[3].mxu0  ;;  %v688_v1 = vpop.f32.mrb[3].mxu1 }
 0x101   :  { %v353_v2 = vadd.f32 %v664_v60, %v600_v57 }
 0x103   :  { %v393_v3 = vadd.f32 %v686_v61, %v353_v2 }
 0x105   :  { %v398_v4 = vmax.f32 %v393_v3, 0.0 }
 0x107   :  { %v399_v5 = vpack.c.bf16 %v398_v4, %v398_v4 }
 0x109   :  { %709 = vmatmul.mubr.msk.bf16.vlgmr.msra.gmra.mrb[4].mxu0 %vm439_vm1, %v399_v5 }
 0x1dc   :  { %v477_v9 = vpop.f32.mrb[4].mxu0 }
 0x1dd   :  { %v478_v10 = vadd.f32 %v633_v8, %v477_v9  ;;  %v710_v11 = vpop.f32.mrb[5].mxu0 }
 0x1de   :  { %v480_v12 = vpop.f32.mrb[6].mxu0 }
 0x1df   :  { %v483_v13 = vmax.f32 %v478_v10, 0.0  ;;  %v711_v14 = vpop.f32.mrb[7].mxu0 }
 0x1e1   :  { %v484_v15 = vpack.c.bf16 %v483_v13, %v483_v13 }
 0x1e3   :  { %721 = vmatmul.mubr.msk.bf16.vlgmr.msra.gmra.mrb[4].mxu1 %vm439_vm1, %v484_v15 }
 0x2b6   :  { %v561_v17 = vpop.f32.mrb[4].mxu1 }
 0x2b7   :  { %v562_v18 = vadd.f32 %v639_v16, %v561_v17  ;;  %v722_v19 = vpop.f32.mrb[5].mxu1 }
 0x2b8   :  { %v564_v20 = vpop.f32.mrb[6].mxu1 }
 0x2b9   :  { %v645_v21 = vmul.f32 -1.442695, %v562_v18  ;;  %v723_v22 = vpop.f32.mrb[7].mxu1 }
 0x2bb   :  { %771 = vpow2.f32 %v645_v21 }
 0x2c5   :  { %v772_v23 = vpop.eup %771 }
 0x2c6   :  { %v570_v24 = vadd.f32 1.0, %v772_v23 }
 0x2c8   :  { %773 = vrcp.f32 %v570_v24 }
 0x2d2   :  { %v774_v25 = vpop.eup %773 }
 0x2d3   :  { %574 = vrot.lane.b32.xlu0 %v774_v25, %s802_s4 }
 0x345   :  { %v575_v26 = vpop.permute.xlu0 %574 }
 0x346   :  { %v577_v27 = vadd.f32 %v774_v25, %v575_v26 }
 0x348   :  { %579 = vrot.lane.b32.xlu0 %v577_v27, %s803_s5 }
 0x3ba   :  { %v580_v28 = vpop.permute.xlu0 %579 }
 0x3bb   :  { %v583_v29 = vsel %vm582_vm2, %v774_v25, %v580_v28 }
 0x3bc   :  { %585 = vst.msk [vmem:[#allocation2] sm:$0x3] %vm584_vm3, %v583_v29 }
 0x3bd   :  { %786 = shalt.err (!%p783_p4)
}
 0x3be   :  { %s787_s20 = scalar_lea.hbm %s998_s7, 32 }
 0x3bf   :  { %p788_p5 = scmp.ne.s32.totalorder %s998_s7, %s787_s20  ;;  %p791_p6 = scmp.lt.u32.totalorder %s787_s20, %s998_s7 }
 0x3c1   :  { %p793_p7 = pnand %p791_p6, %p788_p5 }
 0x3c3   :  { %796 = shalt.err (!%p793_p7)
}
 0x3c4   :  { %595 = dma.vmem_to_hbm [thread:$0]  %s593_s17, 32, %s998_s7, [#allocation3]  }
 0x3c5   :  { %797 = dma.done.wait [#allocation3], 32  }
 0x3c6   :  { %798 = vsyncadd [#allocation3], 4294967264 }
 0x3c7   :  { %599 = vsyncpa [#allocation3], 1 }

</bundles_post_ra>
